<compile_context>
chip_gen: v7x
topology: tpu7x:2x2x1
jax: 0.10.0
libtpu: 0.0.40
codegen_flags: <defaults>
</compile_context>

<pallas_src>
import functools

import jax
import jax.numpy as jnp
from jax.experimental import pallas as pl
from jax.experimental.pallas import tpu as pltpu

_LANE = 128
_SUB = 8                  # f32 sublane count / per-core accumulator rows
_ROW_ALIGN = 16           # block_rows alignment (bf16-friendly too)
_MAX_BLOCK_ROWS = 8192    # (8192, 128) f32 = 4 MiB per input block
_NCORES = 2               # leading "parallel" grid axis (v7x megacore split)
_VMEM_LIMIT = 32 * 1024 * 1024


def _cdiv(a, b):
    return (a + b - 1) // b


def _round_up(x, m):
    return _cdiv(x, m) * m


def _focal_terms(x, y, alpha, gamma, *, use_approx_recip):
    """Stable fused focal chain. Returns w * |y - p|^gamma == -loss per element."""
    e = jnp.exp(-jnp.abs(x))                      # exp(-|x|) in (0, 1]
    lp1 = jnp.log1p(e)                            # softplus(-|x|)
    one_pe = 1.0 + e
    if use_approx_recip:
        inv = pl.reciprocal(one_pe, approx=True)  # EUP vrcp
        inv = inv * (2.0 - one_pe * inv)          # one Newton step -> f32-accurate
    else:
        inv = 1.0 / one_pe
    probs = jnp.where(x >= 0.0, inv, 1.0 - inv)   # sigmoid(x)
    log_probs = jnp.minimum(x, 0.0) - lp1         # log(sigmoid(x))
    log_1_probs = log_probs - x                   # log(1 - sigmoid(x))
    d = y - probs
    if gamma == 2.0:
        mag = d * d                               # gamma==2: no pow (no exp/log)
    else:
        mag = jnp.power(jnp.abs(d), gamma)
    c2 = (1.0 - alpha) * log_1_probs
    weighted = c2 + y * (alpha * log_probs - c2)  # == y*a*lp + (1-y)*(1-a)*l1p
    return weighted * mag                         # == -loss  (coeff = -mag)


def _focal_partial_kernel(x_ref, y_ref, out_ref, *, alpha, gamma,
                          block_rows, blocks_per_core, n_rows):
    c = pl.program_id(0)
    j = pl.program_id(1)

    @pl.when(j == 0)
    def _():
        out_ref[...] = jnp.zeros_like(out_ref)

    x = x_ref[...].astype(jnp.float32)
    y = y_ref[...].astype(jnp.float32)
    contrib = _focal_terms(x, y, alpha, gamma, use_approx_recip=True)

    block = c * blocks_per_core + j                    # unclamped logical block
    is_full = (block + 1) * block_rows <= n_rows       # block entirely real data

    @pl.when(is_full)
    def _():
        out_ref[...] -= jnp.sum(contrib.reshape(-1, _SUB, _LANE), axis=0)

    @pl.when(jnp.logical_not(is_full))
    def _():
        # Partial (ragged) or duplicated (clamped) block: mask rows past the data.
        rid = jax.lax.broadcasted_iota(jnp.int32, (block_rows, _LANE), 0)
        keep = (block * block_rows + rid) < n_rows
        out_ref[...] -= jnp.sum(
            jnp.where(keep, contrib, 0.0).reshape(-1, _SUB, _LANE), axis=0)


def sigmoid_focal_loss(logits, label, alpha=0.25, gamma=2.0, reduction="mean"):
    assert logits.shape == label.shape
    if reduction not in ("mean", "sum"):
        # TODO(synk): reduction='none' (per-element loss map output) not implemented.
        raise NotImplementedError("only 'mean' and 'sum' reductions are supported")

    alpha = float(alpha)
    gamma = float(gamma)
    total = logits.size
    x_flat = logits.reshape(-1)
    y_flat = label.reshape(-1)

    rem = total % _LANE
    bulk = total - rem

    # Sub-128-element tail of non-lane-aligned sizes: plain jnp (negligible
    # work; avoids any full-array pad/copy in front of the kernel).
    if rem:
        tail = -jnp.sum(_focal_terms(x_flat[bulk:].astype(jnp.float32),
                                     y_flat[bulk:].astype(jnp.float32),
                                     alpha, gamma, use_approx_recip=False))
    else:
        tail = jnp.float32(0.0)

    if bulk == 0:
        total_sum = tail
    else:
        rows = bulk // _LANE
        # Minimum number of <=_MAX_BLOCK_ROWS blocks per core, split evenly.
        blocks_per_core = max(1, _cdiv(rows, _NCORES * _MAX_BLOCK_ROWS))
        block_rows = min(_MAX_BLOCK_ROWS,
                         _round_up(_cdiv(rows, _NCORES * blocks_per_core),
                                   _ROW_ALIGN))
        n_blocks = _cdiv(rows, block_rows)         # blocks holding real data

        x2 = (x_flat[:bulk] if rem else x_flat).reshape(rows, _LANE)
        y2 = (y_flat[:bulk] if rem else y_flat).reshape(rows, _LANE)

        def in_map(c, j):
            # Clamp so out-of-range (duplicate) blocks still DMA valid memory;
            # their contribution is masked to exactly zero inside the kernel.
            return (jnp.minimum(c * blocks_per_core + j, n_blocks - 1), 0)

        partials = pl.pallas_call(
            functools.partial(
                _focal_partial_kernel, alpha=alpha, gamma=gamma,
                block_rows=block_rows, blocks_per_core=blocks_per_core,
                n_rows=rows),
            out_shape=jax.ShapeDtypeStruct((_NCORES * _SUB, _LANE), jnp.float32),
            grid_spec=pltpu.PrefetchScalarGridSpec(
                num_scalar_prefetch=0,
                grid=(_NCORES, blocks_per_core),
                in_specs=[
                    pl.BlockSpec((block_rows, _LANE), in_map),
                    pl.BlockSpec((block_rows, _LANE), in_map),
                ],
                out_specs=pl.BlockSpec((_SUB, _LANE), lambda c, j: (c, 0)),
            ),
            compiler_params=pltpu.CompilerParams(
                dimension_semantics=("parallel", "arbitrary"),
                vmem_limit_bytes=_VMEM_LIMIT,
            ),
        )(x2, y2)
        total_sum = jnp.sum(partials) + tail

    if reduction == "mean":
        return total_sum / jnp.float32(total)
    return total_sum


def _reference(logits, label, alpha=0.25, gamma=2.0, reduction="mean"):
    # Faithful port of the PyTorch module's formula (stable softplus branches).
    x = logits.astype(jnp.float32)
    y = label.astype(jnp.float32)
    probs = jax.nn.sigmoid(x)
    coeff = -jnp.power(jnp.abs(y - probs), gamma)
    sp_neg = jnp.where(-x > 50.0, x, -jnp.log1p(jnp.exp(-x)))   # softplus(x, -1, 50)
    sp_pos = jnp.where(x > 50.0, x, jnp.log1p(jnp.exp(x)))      # softplus(x, 1, 50)
    log_probs = jnp.where(x >= 0.0, sp_neg, x - sp_pos)
    log_1_probs = jnp.where(x >= 0.0, -x + sp_neg, -sp_pos)
    loss = y * alpha * log_probs + (1.0 - y) * (1.0 - alpha) * log_1_probs
    loss = loss * coeff
    return jnp.mean(loss) if reduction == "mean" else jnp.sum(loss)


if __name__ == "__main__":
    key = jax.random.PRNGKey(0)
    k1, k2 = jax.random.split(key)

    # Lane-aligned NCHW case (primary path, no tail).
    shape = (2, 4, 16, 16)
    logits = jax.random.normal(k1, shape, dtype=jnp.float32) * 3.0
    label = (jax.random.uniform(k2, shape) < 0.5).astype(jnp.float32)

    loss = sigmoid_focal_loss(logits, label, alpha=0.25, gamma=2.0, reduction="mean")
    loss = jax.block_until_ready(loss)
    ref = _reference(logits, label, alpha=0.25, gamma=2.0, reduction="mean")
    assert jnp.allclose(loss, ref, rtol=1e-5, atol=1e-6), (loss, ref)

    loss_sum = jax.block_until_ready(
        sigmoid_focal_loss(logits, label, reduction="sum"))
    ref_sum = _reference(logits, label, reduction="sum")
    assert jnp.allclose(loss_sum, ref_sum, rtol=1e-5, atol=1e-4), (loss_sum, ref_sum)

    # Non-lane-aligned shape: exercises the ragged-block mask + jnp tail path.
    shape2 = (3, 5, 7, 11)
    logits2 = jax.random.normal(k1, shape2, dtype=jnp.float32) * 3.0
    label2 = (jax.random.uniform(k2, shape2) < 0.5).astype(jnp.float32)
    loss2 = jax.block_until_ready(
        sigmoid_focal_loss(logits2, label2, reduction="mean"))
    ref2 = _reference(logits2, label2, reduction="mean")
    assert jnp.allclose(loss2, ref2, rtol=1e-5, atol=1e-6), (loss2, ref2)

    print("KERNEL_OK")
</pallas_src>

<mosaic_0001>
module attributes {stable_mosaic.version = 11 : i64} {
  func.func @_focal_partial_kernel(%arg0: i32, %arg1: i32, %arg2: memref<16x128xf32, #tpu.memory_space<vmem>>, %arg3: memref<16x128xf32, #tpu.memory_space<vmem>>, %arg4: memref<8x128xf32, #tpu.memory_space<vmem>>) attributes {dimension_semantics = [#tpu.dimension_semantics<parallel>, #tpu.dimension_semantics<arbitrary>], iteration_bounds = array<i64: 2, 1>, scalar_prefetch = 0 : i64, scratch_operands = 0 : i64, tpu.core_type = #tpu.core_type<tc>, window_params = [{transform_indices = @transform_0, window_bounds = array<i64: 16, 128>}, {transform_indices = @transform_1, window_bounds = array<i64: 16, 128>}, {transform_indices = @transform_2, window_bounds = array<i64: 8, 128>}]} {
    %c0_i32 = arith.constant 0 : i32
    %0 = arith.cmpi eq, %arg1, %c0_i32 : i32
    %1 = arith.extui %0 : i1 to i32
    %c0_i32_0 = arith.constant 0 : i32
    %2 = arith.cmpi ne, %1, %c0_i32_0 : i32
    scf.if %2 {
      %cst_15 = arith.constant 0.000000e+00 : f32
      %46 = vector.broadcast %cst_15 : f32 to vector<8x128xf32>
      %c0_16 = arith.constant 0 : index
      %c0_17 = arith.constant 0 : index
      %47 = vector.load %arg4[%c0_16, %c0_17] : memref<8x128xf32, #tpu.memory_space<vmem>>, vector<8x128xf32>
      tpu.vector_store %arg4[%c0_16, %c0_17], %46 {strides = array<i32>} : memref<8x128xf32, #tpu.memory_space<vmem>>, vector<8x128xf32>,
    } else {
    }
    %c0 = arith.constant 0 : index
    %c0_1 = arith.constant 0 : index
    %3 = vector.load %arg2[%c0, %c0_1] : memref<16x128xf32, #tpu.memory_space<vmem>>, vector<16x128xf32>
    %c0_2 = arith.constant 0 : index
    %c0_3 = arith.constant 0 : index
    %4 = vector.load %arg3[%c0_2, %c0_3] : memref<16x128xf32, #tpu.memory_space<vmem>>, vector<16x128xf32>
    %5 = math.absf %3 : vector<16x128xf32>
    %cst = arith.constant 0.000000e+00 : f32
    %6 = vector.broadcast %cst : f32 to vector<16x128xf32>
    %7 = arith.subf %6, %5 : vector<16x128xf32>
    %8 = math.exp %7 : vector<16x128xf32>
    %9 = math.log1p %8 : vector<16x128xf32>
    %cst_4 = arith.constant 1.000000e+00 : f32
    %10 = vector.broadcast %cst_4 : f32 to vector<16x128xf32>
    %11 = arith.addf %10, %8 : vector<16x128xf32>
    %12 = tpu.reciprocal %11 {approx = true} : vector<16x128xf32> -> vector<16x128xf32>
    %13 = arith.mulf %11, %12 : vector<16x128xf32>
    %cst_5 = arith.constant 2.000000e+00 : f32
    %14 = vector.broadcast %cst_5 : f32 to vector<16x128xf32>
    %15 = arith.subf %14, %13 : vector<16x128xf32>
    %16 = arith.mulf %12, %15 : vector<16x128xf32>
    %cst_6 = arith.constant 0.000000e+00 : f32
    %17 = vector.broadcast %cst_6 : f32 to vector<16x128xf32>
    %18 = arith.cmpf oge, %3, %17 : vector<16x128xf32>
    %cst_7 = arith.constant 1.000000e+00 : f32
    %19 = vector.broadcast %cst_7 : f32 to vector<16x128xf32>
    %20 = arith.subf %19, %16 : vector<16x128xf32>
    %21 = arith.select %18, %16, %20 : vector<16x128xi1>, vector<16x128xf32>
    %cst_8 = arith.constant 0.000000e+00 : f32
    %22 = vector.broadcast %cst_8 : f32 to vector<16x128xf32>
    %23 = arith.minimumf %3, %22 : vector<16x128xf32>
    %24 = arith.subf %23, %9 : vector<16x128xf32>
    %25 = arith.subf %24, %3 : vector<16x128xf32>
    %26 = arith.subf %4, %21 : vector<16x128xf32>
    %27 = arith.mulf %26, %26 : vector<16x128xf32>
    %cst_9 = arith.constant 7.500000e-01 : f32
    %28 = vector.broadcast %cst_9 : f32 to vector<16x128xf32>
    %29 = arith.mulf %28, %25 : vector<16x128xf32>
    %cst_10 = arith.constant 2.500000e-01 : f32
    %30 = vector.broadcast %cst_10 : f32 to vector<16x128xf32>
    %31 = arith.mulf %30, %24 : vector<16x128xf32>
    %32 = arith.subf %31, %29 : vector<16x128xf32>
    %33 = arith.mulf %4, %32 : vector<16x128xf32>
    %34 = arith.addf %29, %33 : vector<16x128xf32>
    %35 = arith.mulf %34, %27 : vector<16x128xf32>
    %c1_i32 = arith.constant 1 : i32
    %36 = arith.muli %arg0, %c1_i32 : i32
    %37 = arith.addi %36, %arg1 : i32
    %c1_i32_11 = arith.constant 1 : i32
    %38 = arith.addi %37, %c1_i32_11 : i32
    %c16_i32 = arith.constant 16 : i32
    %39 = arith.muli %38, %c16_i32 : i32
    %c16_i32_12 = arith.constant 16 : i32
    %40 = arith.cmpi sle, %39, %c16_i32_12 : i32
    %41 = arith.extui %40 : i1 to i32
    %c0_i32_13 = arith.constant 0 : i32
    %42 = arith.cmpi ne, %41, %c0_i32_13 : i32
    scf.if %42 {
      %c0_15 = arith.constant 0 : index
      %c0_16 = arith.constant 0 : index
      %46 = vector.load %arg4[%c0_15, %c0_16] : memref<8x128xf32, #tpu.memory_space<vmem>>, vector<8x128xf32>
      %47 = vector.shape_cast %35 : vector<16x128xf32> to vector<2x8x128xf32>
      %cst_17 = arith.constant dense<0.000000e+00> : vector<8x128xf32>
      %48 = vector.multi_reduction <add>, %47, %cst_17 [0] : vector<2x8x128xf32> to vector<8x128xf32>
      %49 = arith.subf %46, %48 : vector<8x128xf32>
      %c0_18 = arith.constant 0 : index
      %c0_19 = arith.constant 0 : index
      %50 = vector.load %arg4[%c0_18, %c0_19] : memref<8x128xf32, #tpu.memory_space<vmem>>, vector<8x128xf32>
      tpu.vector_store %arg4[%c0_18, %c0_19], %49 {strides = array<i32>} : memref<8x128xf32, #tpu.memory_space<vmem>>, vector<8x128xf32>,
    } else {
    }
    %true = arith.constant true
    %43 = arith.xori %40, %true : i1
    %44 = arith.extui %43 : i1 to i32
    %c0_i32_14 = arith.constant 0 : i32
    %45 = arith.cmpi ne, %44, %c0_i32_14 : i32
    scf.if %45 {
      %46 = tpu.iota {dimensions = array<i32: 0>} : vector<16x128xi32>
      %c16_i32_15 = arith.constant 16 : i32
      %47 = arith.muli %37, %c16_i32_15 : i32
      %48 = vector.broadcast %47 : i32 to vector<16x128xi32>
      %49 = arith.addi %48, %46 : vector<16x128xi32>
      %c16_i32_16 = arith.constant 16 : i32
      %50 = vector.broadcast %c16_i32_16 : i32 to vector<16x128xi32>
      %51 = arith.cmpi slt, %49, %50 : vector<16x128xi32>
      %c0_17 = arith.constant 0 : index
      %c0_18 = arith.constant 0 : index
      %52 = vector.load %arg4[%c0_17, %c0_18] : memref<8x128xf32, #tpu.memory_space<vmem>>, vector<8x128xf32>
      %cst_19 = arith.constant 0.000000e+00 : f32
      %53 = vector.broadcast %cst_19 : f32 to vector<16x128xf32>
      %54 = arith.select %51, %35, %53 : vector<16x128xi1>, vector<16x128xf32>
      %55 = vector.shape_cast %54 : vector<16x128xf32> to vector<2x8x128xf32>
      %cst_20 = arith.constant dense<0.000000e+00> : vector<8x128xf32>
      %56 = vector.multi_reduction <add>, %55, %cst_20 [0] : vector<2x8x128xf32> to vector<8x128xf32>
      %57 = arith.subf %52, %56 : vector<8x128xf32>
      %c0_21 = arith.constant 0 : index
      %c0_22 = arith.constant 0 : index
      %58 = vector.load %arg4[%c0_21, %c0_22] : memref<8x128xf32, #tpu.memory_space<vmem>>, vector<8x128xf32>
      tpu.vector_store %arg4[%c0_21, %c0_22], %57 {strides = array<i32>} : memref<8x128xf32, #tpu.memory_space<vmem>>, vector<8x128xf32>,
    } else {
    }
    return
  }
  func.func @transform_0(%arg0: i32, %arg1: i32) -> (i32, i32) {
    %c1_i32 = arith.constant 1 : i32
    %0 = arith.muli %arg0, %c1_i32 : i32
    %1 = arith.addi %0, %arg1 : i32
    %c0_i32 = arith.constant 0 : i32
    %2 = arith.minsi %1, %c0_i32 : i32
    %c0_i32_0 = arith.constant 0 : i32
    %c0_i32_1 = arith.constant 0 : i32
    return %2, %c0_i32_0 : i32, i32
  }
  func.func @transform_1(%arg0: i32, %arg1: i32) -> (i32, i32) {
    %c1_i32 = arith.constant 1 : i32
    %0 = arith.muli %arg0, %c1_i32 : i32
    %1 = arith.addi %0, %arg1 : i32
    %c0_i32 = arith.constant 0 : i32
    %2 = arith.minsi %1, %c0_i32 : i32
    %c0_i32_0 = arith.constant 0 : i32
    %c0_i32_1 = arith.constant 0 : i32
    return %2, %c0_i32_0 : i32, i32
  }
  func.func @transform_2(%arg0: i32, %arg1: i32) -> (i32, i32) {
    %c0_i32 = arith.constant 0 : i32
    %c0_i32_0 = arith.constant 0 : i32
    return %arg0, %c0_i32 : i32, i32
  }
}

</mosaic_0001>

<bundles_post_ra>
// kernel: tpu_custom_call.1
= control target key start
LH: loop header
LB: loop body
LE: loop exit
PB: predicated region body
PF: predicated region fallthrough
CT: control target
= control target key end

     0   :  { %7 = vsyncpa [#allocation3], 0  ;;  %s1002_s0 = inlined_call_operand.hbm [shape: f32[16,128], index: 0, kind: input, shape index: {}]   ;;  %s1003_s1 = inlined_call_operand.hbm [shape: f32[16,128], index: 1, kind: input, shape index: {}]   ;;  %s1004_s2 = inlined_call_operand.hbm [shape: f32[16,128], index: 2, kind: output, shape index: {}]  }
   0x1   :  { %9 = vsyncpa [#allocation3 + $0x1], 0 }
   0x2   :  { %10 = vsyncpa [#allocation6], 0 }
   0x3   :  { %12 = vsyncpa [#allocation6 + $0x1], 0 }
   0x4   :  { %13 = vsyncpa [#allocation4], 0 }
   0x5   :  { %15 = vsyncpa [#allocation4 + $0x1], 0  ;;  %s780_s9 = smov 0   ;;  %s782_s10 = smov 0  }
   0x6   :  { %s784_s11 = smov 0   ;;  %s786_s12 = smov 0  }
   0x7   :  { %s788_s13 = smov 0   ;;  %s790_s14 = smov 0  }
   0x8   :  { %s792_s15 = smov 0   ;;  %s794_s16 = smov 0  }
   0x9 LB: > { %s458_s17 = sadd.s32 4294967295, %s757_s16   ;;  %s459_s18 = sadd.s32 4294967294, %s757_s16   ;;  %s757_s16 = sphi %s794_s16, %s21_s16   ;;  %s753_s15 = sphi %s792_s15, %s1023_s15   ;;  %s749_s14 = sphi %s790_s14, %s1022_s14   ;;  %s745_s13 = sphi %s788_s13, %s992_s13   ;;  %s741_s12 = sphi %s786_s12, %s1021_s12   ;;  %s737_s11 = sphi %s784_s11, %s1020_s11   ;;  %s733_s10 = sphi %s782_s10, %s1019_s10   ;;  %s729_s9 = sphi %s780_s9, %s1018_s9  }
   0xa   : > { %s33_s19 = sadd.s32 1, %s753_s15  ;;  %p726_p1 = scmp.ne.s32.totalorder %s745_s13, 0 }
   0xb   : > { %p35_p0 = scmp.ge.s32.totalorder %s33_s19, 2  ;;  %p54_p2 = scmp.eq.s32.totalorder %s757_s16, 0 }
   0xc   : > { %p59_p3 = scmp.ne.s32.totalorder %s745_s13, %s741_s12  ;;  %p60_p5 = scmp.eq.s32.totalorder %s458_s17, 0 }
   0xd   : > { %s1025_s19 = smov (%p35_p0, %s33_s19), 0  ;;  %p826_p4 = por %p726_p1, %p54_p2 }
   0xe   : > { %p830_p6 = por %p60_p5, %p59_p3  ;;  %s101_s22 = ssub.s32 %s753_s15, %s1025_s19 }
   0xf   : > { %p102_p7 = scmp.eq.s32.totalorder %s101_s22, 0  ;;  %s104_s23 = sadd.s32 1, %s737_s11 }
  0x10   : > { %s1008_s21 = scalar_select %p830_p6, 1, 0 }
  0x11   : > { %s838_s24 = scalar_select %p102_p7, %s737_s11, %s104_s23  }
  0x12   : > { %p114_p8 = scmp.ne.s32.totalorder %s737_s11, %s733_s10  ;;  %p115_p9 = scmp.eq.s32.totalorder %s458_s17, 1 }
  0x13   : > { %p120_p10 = scmp.ne.s32.totalorder %s733_s10, %s729_s9  ;;  %p121_p11 = scmp.eq.s32.totalorder %s459_s18, 1 }
  0x14   : > { %p844_p12 = por %p115_p9, %p114_p8  ;;  %p501_p1 = scmp.lt.s32.totalorder %s757_s16, 2 }
  0x15   : > { %p849_p0 = por %p121_p11, %p120_p10  ;;  %s759_s27 = smov [#allocation2]  }
  0x16   : > { %s1009_s25 = scalar_select %p844_p12, 1, 0 }
  0x17   : > { %s1010_s26 = scalar_select %p849_p0, 1, 0 }
  0x18   : > { %s155_s28 = sshll.u32 %s759_s27, 4  ;;  %p856_p2 = pnand %p501_p1, %p826_p4  ;;  %s156_s28 = int_to_ptr.vmem [resolvable:$true] %s155_s28 }
  0x19   : > { %s590_s4 = scalar_lea.hbm %s1002_s0, 256 }
  0x1a   : > { %p591_p3 = scmp.ne.s32.totalorder %s1002_s0, %s590_s4  ;;  %p592_p5 = pneg %p856_p2 }
  0x1b   : > { %p597_p8 = scmp.lt.u32.totalorder %s590_s4, %s590_s4  ;;  %p599_p9 = scmp.lt.u32.totalorder %s590_s4, %s1002_s0 }
  0x1c   : > { %p593_p7 = pnand %p592_p5, %p591_p3 }
  0x1d   : > { %p600_p10 = por %p599_p9, %p597_p8 }
  0x1e   : > { %p594_p4 = pneg %p593_p7 }
  0x20   : > { %p601_p11 = pnand %p600_p10, %p594_p4 }
  0x22   : > { %604 = shalt.err (!%p601_p11)
}
  0x23   : > { %s605_s12 = scalar_lea.vmem %s156_s28, 256  ;;  %s612_s17 = scalar_lea.vmem %s156_s28, 512 }
  0x24   : > { %p606_p1 = scmp.ne.s32.totalorder %s156_s28, %s605_s12  ;;  %p613_p12 = scmp.lt.s32.totalorder %s156_s28, %s156_s28 }
  0x25   : > { %p614_p6 = scmp.lt.s32.totalorder %s612_s17, %s605_s12 }
  0x26   : > { %p608_p13 = pnand %p606_p1, %p592_p5 }
  0x27   : > { %p615_p3 = por %p614_p6, %p613_p12 }
  0x28   : > { %p609_p0 = pneg %p608_p13 }
  0x2a   : > { %p616_p7 = pnand %p615_p3, %p609_p0 }
  0x2c   : > { %619 = shalt.err (!%p616_p7)
}
  0x2d   : > { %s760_s18 = smov 128   ;;  %s761_s20 = smov 8  }
  0x2e   : > { %493 = dma.hbm_to_vmem [thread:$0]  (!%p856_p2), %s1002_s0, 256, %s156_s28, [#allocation3], %s760_s18, %s760_s18, %s761_s20  }
  0x2f   : > { %p468_p13 = scmp.ge.s32.totalorder %s757_s16, 1  ;;  %p187_p4 = scmp.lt.s32.totalorder %s757_s16, 3 }
  0x30   : > { %s762_s30 = smov [#allocation5]   ;;  %s620_s6 = scalar_lea.hbm %s1003_s1, 256 }
  0x31   : > { %p887_p8 = pnand %p468_p13, %p187_p4  ;;  %s179_s3 = sshll.u32 %s762_s30, 4  ;;  %s180_s3 = int_to_ptr.vmem [resolvable:$true] %s179_s3 }
  0x32   : > { %p621_p6 = scmp.ne.s32.totalorder %s1003_s1, %s620_s6  ;;  %p627_p9 = scmp.lt.u32.totalorder %s620_s6, %s620_s6 }
  0x33   : > { %s1012_s27 = scalar_select %p887_p8, 1, 0 }
  0x34   : > { %p623_p12 = pnand %p621_p6, %p592_p5  ;;  %p629_p10 = scmp.lt.u32.totalorder %s620_s6, %s1003_s1 }
  0x36   : > { %p624_p0 = pneg %p623_p12  ;;  %p630_p11 = por %p629_p10, %p627_p9 }
  0x38   : > { %p631_p1 = pnand %p630_p11, %p624_p0 }
  0x3a   : > { %634 = shalt.err (!%p631_p1)
}
  0x3b   : > { %s635_s17 = scalar_lea.vmem %s180_s3, 256  ;;  %s642_s22 = scalar_lea.vmem %s180_s3, 512 }
  0x3c   : > { %p636_p3 = scmp.ne.s32.totalorder %s180_s3, %s635_s17  ;;  %p643_p4 = scmp.lt.s32.totalorder %s180_s3, %s180_s3 }
  0x3d   : > { %p644_p8 = scmp.lt.s32.totalorder %s642_s22, %s635_s17 }
  0x3e   : > { %p638_p7 = pnand %p636_p3, %p592_p5 }
  0x3f   : > { %p645_p6 = por %p644_p8, %p643_p4 }
  0x40   : > { %p639_p13 = pneg %p638_p7 }
  0x42   : > { %p646_p12 = pnand %p645_p6, %p639_p13 }
  0x44   : > { %649 = shalt.err (!%p646_p12)
}
  0x45   : > { %496 = dma.hbm_to_vmem [thread:$0]  (!%p856_p2), %s1003_s1, 256, %s180_s3, [#allocation6], %s760_s18, %s760_s18, %s761_s20  }
  0x46   : > { %p1013_p0 = scmp.ne.s32.totalorder %s1012_s27, 0 }
  0x47   : > { %s193_s4 = sand.u32 (!%p1013_p0), 1, %s745_s13   ;;  %p1014_p5 = scmp.ne.s32.totalorder (!%p1013_p0), %s1008_s21, 0 }
  0x48   : > { %191 = sbr.rel (%p1013_p0) target bundleno = 177 (0xb1), region = 28  ;;  %s469_s5 = sshll.u32 (!%p1013_p0), %s193_s4, 4 }
  0x49   : > { %s194_s6 = scalar_lea.sflag (!%p1013_p0), [#allocation3], %s193_s4  ;;  %s197_s7 = scalar_lea.vmem (!%p1013_p0), [#allocation2], %s469_s5 }
  0x4f   : > { %715 = dma.done.wait (%p1014_p5), %s194_s6, 256  }
  0x50   : > { %717 = vsyncadd (%p1014_p5), %s194_s6, 4294967040  ;;  %s203_s29 = scalar_lea.sflag [#allocation6], %s193_s4  ;;  %s921_s8 = scalar_lea.vmem [#allocation5], %s469_s5 }
  0x51   : > { %719 = dma.done.wait (%p1014_p5), %s203_s29, 256  }
  0x52   : > { %721 = vsyncadd (%p1014_p5), %s203_s29, 4294967040  ;;  %s229_s18 = sand.u32 1, %s733_s10   ;;  %s482_s20 = sshll.u32 %s749_s14, 4  ;;  %v763_v0 = vmov 0.0   ;;  %v245_v1 = vld [vmem:[%s197_s7] sm:$0xff]  ;;  %v246_v2 = vld [vmem:[%s197_s7 + $0x8] sm:$0xff] }
  0x53   : > { %s471_s27 = sshll.u32 %s229_s18, 3  ;;  %s933_s3 = sadd.s32 16, %s482_s20  ;;  %v249_v3 = vand.u32 2147483647, %v245_v1  ;;  %v250_v4 = vand.u32 2147483647, %v246_v2 }
  0x54   : > { %s935_s28 = scalar_lea.vmem [#allocation7], %s471_s27  ;;  %v291_v22 = vmin.f32 %v245_v1, 0.0  ;;  %v292_v25 = vmin.f32 %v246_v2, 0.0  ;;  %vm285_vm2 = vcmp.ge.f32.partialorder %v245_v1, 0.0  ;;  %v247_v44 = vld [vmem:[%s921_s8] sm:$0xff]  ;;  %vm286_vm3 = vcmp.ge.f32.partialorder %v246_v2, 0.0 }
  0x55   : > { %244 = vst [vmem:[%s935_s28] sm:$0xff] %v763_v0  ;;  %v251_v5 = vsub.f32 0.0, %v249_v3  ;;  %v252_v6 = vsub.f32 0.0, %v250_v4  ;;  %v248_v47 = vld [vmem:[%s921_s8 + $0x8] sm:$0xff]  ;;  %p473_p2 = scmp.gt.s32.totalorder %s933_s3, 16 }
  0x57   : > { %v253_v7 = vmul.f32 1.442695, %v251_v5  ;;  %v255_v8 = vmul.f32 1.442695, %v252_v6 }
  0x59   : > { %578 = vpow2.f32 %v253_v7 }
  0x5a   : > { %580 = vpow2.f32 %v255_v8 }
  0x5c   : > { %v320_v63 = vld [vmem:[%s935_s28] sm:$0xff] (!%p473_p2) }
  0x63   : > { %v579_v9 = vpop.eup %578 }
  0x64   : > { %v581_v10 = vpop.eup %580  ;;  %v257_v11 = vadd.f32 1.0, %v579_v9  ;;  %v260_v13 = vmul.f32 -0.5, %v579_v9  ;;  %v263_v16 = vand.u32 2147483647, %v579_v9 }
  0x65   : > { %v266_v12 = vadd.f32 1.0, %v581_v10  ;;  %v269_v14 = vmul.f32 -0.5, %v581_v10  ;;  %v272_v18 = vand.u32 2147483647, %v581_v10 }
  0x66   : > { %582 = vlog2.f32 %v257_v11  ;;  %v261_v15 = vadd.f32 1.0, %v260_v13  ;;  %vm264_vm0 = vcmp.lt.f32.partialorder %v263_v16, 0.0004427343 }
  0x67   : > { %584 = vlog2.f32 %v266_v12  ;;  %v270_v17 = vadd.f32 1.0, %v269_v14  ;;  %vm273_vm1 = vcmp.lt.f32.partialorder %v272_v18, 0.0004427343 }
  0x68   : > { %586 = vrcp.f32 %v257_v11  ;;  %v262_v19 = vmul.f32 %v579_v9, %v261_v15 }
  0x69   : > { %588 = vrcp.f32 %v266_v12  ;;  %v271_v21 = vmul.f32 %v581_v10, %v270_v17 }
  0x70   : > { %v583_v20 = vpop.eup %582 }
  0x71   : > { %v585_v23 = vpop.eup %584  ;;  %v259_v24 = vmul.f32 0.6931472, %v583_v20 }
  0x72   : > { %v587_v26 = vpop.eup %586  ;;  %v268_v27 = vmul.f32 0.6931472, %v585_v23 }
  0x73   : > { %v589_v28 = vpop.eup %588  ;;  %v265_v29 = vsel %vm264_vm0, %v262_v19, %v259_v24  ;;  %v279_v30 = vmul.f32 %v587_v26, %v257_v11 }
  0x74   : > { %v274_v31 = vsel %vm273_vm1, %v271_v21, %v268_v27  ;;  %v280_v32 = vmul.f32 %v589_v28, %v266_v12  ;;  %v293_v33 = vsub.f32 %v291_v22, %v265_v29 }
  0x75   : > { %v281_v34 = vsub.f32 2.0, %v279_v30  ;;  %v294_v35 = vsub.f32 %v292_v25, %v274_v31 }
  0x76   : > { %v282_v36 = vsub.f32 2.0, %v280_v32  ;;  %v295_v37 = vsub.f32 %v293_v33, %v245_v1  ;;  %v303_v38 = vmul.f32 0.25, %v293_v33 }
  0x77   : > { %v283_v39 = vmul.f32 %v587_v26, %v281_v34  ;;  %v296_v40 = vsub.f32 %v294_v35, %v246_v2  ;;  %v304_v41 = vmul.f32 0.25, %v294_v35 }
  0x78   : > { %v284_v42 = vmul.f32 %v589_v28, %v282_v36  ;;  %v301_v43 = vmul.f32 0.75, %v295_v37 }
  0x79   : > { %v287_v45 = vsub.f32 1.0, %v283_v39  ;;  %v302_v46 = vmul.f32 0.75, %v296_v40 }
  0x7a   : > { %v288_v48 = vsub.f32 1.0, %v284_v42  ;;  %v305_v49 = vsub.f32 %v303_v38, %v301_v43 }
  0x7b   : > { %v289_v50 = vsel %vm285_vm2, %v283_v39, %v287_v45  ;;  %v306_v51 = vsub.f32 %v304_v41, %v302_v46  ;;  %319 = sbr.rel (%p473_p2) target bundleno = 136 (0x88), region = 44 }
  0x7c   : > { %v290_v52 = vsel %vm286_vm3, %v284_v42, %v288_v48  ;;  %v297_v53 = vsub.f32 %v247_v44, %v289_v50  ;;  %v307_v54 = vmul.f32 %v305_v49, %v247_v44 }
  0x7d   : > { %v298_v55 = vsub.f32 %v248_v47, %v290_v52  ;;  %v308_v56 = vmul.f32 %v306_v51, %v248_v47 }
  0x7e   : > { %v299_v57 = vmul.f32 %v297_v53, %v297_v53  ;;  %v309_v58 = vadd.f32 %v307_v54, %v301_v43 }
  0x7f   : > { %v300_v59 = vmul.f32 %v298_v55, %v298_v55  ;;  %v310_v60 = vadd.f32 %v308_v56, %v302_v46 }
  0x80   : > { %v311_v61 = vmul.f32 %v309_v58, %v299_v57 }
  0x81   : > { %v312_v62 = vmul.f32 %v310_v60, %v300_v59 }
  0x83   : > { %v321_v0 = vadd.f32 %v312_v62, %v311_v61 }
  0x85   : > { %v322_v1 = vsub.f32 %v320_v63, %v321_v0 }
  0x87   : > { %323 = vst [vmem:[%s935_s28] sm:$0xff] %v322_v1 }
  0x88 PF: > { %p474_p8 = scmp.le.s32.totalorder %s933_s3, 16 }
  0x89   : > { %v328_v2 = vlaneseq (!%p474_p8)  ;;  %v332_v3 = vstv (!%p474_p8), %s482_s20 }
  0x8a   : > { %327 = sbr.rel (%p474_p8) target bundleno = 152 (0x98), region = 48 }
  0x8b   : > { %v329_v4 = vshrl.u32 (!%p474_p8), %v328_v2, 7 }
  0x8d   : > { %v330_v5 = vadd.s32 (!%p474_p8), 8, %v329_v4  ;;  %v333_v6 = vadd.s32 (!%p474_p8), %v332_v3, %v329_v4 }
  0x8e   : > { %v337_v9 = vld [vmem:[%s935_s28] sm:$0xff] (!%p474_p8) }
  0x8f   : > { %v334_v7 = vadd.s32 (!%p474_p8), %v332_v3, %v330_v5  ;;  %vm335_vm4 = vcmp.lt.s32.totalorder (!%p474_p8), %v333_v6, 16 }
  0x90   : > { %v338_v8 = vsel (!%p474_p8), %vm335_vm4, %v311_v61, 0.0 }
  0x91   : > { %vm336_vm5 = vcmp.lt.s32.totalorder %v334_v7, 16 }
  0x92   : > { %v339_v10 = vsel %vm336_vm5, %v312_v62, 0.0 }
  0x93   : > { %v340_v11 = vadd.f32 %v339_v10, %v338_v8 }
  0x95   : > { %v341_v12 = vsub.f32 %v337_v9, %v340_v11 }
  0x97   : > { %342 = vst [vmem:[%s935_s28] sm:$0xff] %v341_v12 }
  0x98 PF: > { %s477_s21 = sshll.u32 %s749_s14, 7  ;;  %s357_s23 = sshll.u32 %s935_s28, 4  ;;  %s358_s23 = int_to_ptr.vmem [resolvable:$true] %s357_s23 }
  0x99   : > { %s952_s22 = scalar_lea.hbm %s1004_s2, %s477_s21  ;;  %s344_s30 = scalar_lea.sflag [#allocation4], %s229_s18 }
  0x9a   : > { %s650_s4 = scalar_lea.vmem %s358_s23, 128  ;;  %p1015_p10 = scmp.ne.s32.totalorder %s1009_s25, 0 }
  0x9b   : > { %p651_p9 = scmp.ne.s32.totalorder %s358_s23, %s650_s4  ;;  %s764_s5 = smov [#allocation7]  }
  0x9c   : > { %s654_s6 = sshll.u32 %s764_s5, 4  ;;  %s655_s6 = int_to_ptr.vmem [resolvable:$false] %s654_s6 }
  0x9d   : > { %p652_p11 = pnand %p651_p9, %p1015_p10  ;;  %s656_s7 = scalar_lea.vmem %s655_s6, 256 }
  0x9e   : > { %p657_p3 = scmp.lt.s32.totalorder %s358_s23, %s655_s6  ;;  %p658_p7 = scmp.lt.s32.totalorder %s656_s7, %s650_s4 }
  0x9f   : > { %p653_p1 = pneg %p652_p11 }
  0xa0   : > { %p659_p13 = por %p658_p7, %p657_p3 }
  0xa2   : > { %p660_p4 = pnand %p659_p13, %p653_p1 }
  0xa4   : > { %663 = shalt.err (!%p660_p4)
}
  0xa5   : > { %s664_s14 = scalar_lea.hbm %s952_s22, 128  ;;  %s668_s18 = scalar_lea.hbm %s1004_s2, 256 }
  0xa6   : > { %p665_p6 = scmp.ne.s32.totalorder %s952_s22, %s664_s14  ;;  %p669_p5 = scmp.lt.u32.totalorder %s952_s22, %s1004_s2 }
  0xa7   : > { %p670_p2 = scmp.lt.u32.totalorder %s668_s18, %s664_s14  ;;  %p672_p9 = scmp.lt.u32.totalorder %s664_s14, %s952_s22 }
  0xa8   : > { %p666_p12 = pnand %p665_p6, %p1015_p10 }
  0xa9   : > { %p671_p8 = por %p670_p2, %p669_p5 }
  0xaa   : > { %p667_p0 = pneg %p666_p12 }
  0xab   : > { %p673_p11 = por %p672_p9, %p671_p8 }
  0xad   : > { %p674_p1 = pnand %p673_p11, %p667_p0 }
  0xaf   : > { %677 = shalt.err (!%p674_p1)
}
  0xb0   : > { %488 = dma.vmem_to_hbm [thread:$0]  (%p1015_p10), %s358_s23, 128, %s952_s22, %s344_s30  }
  0xb1 PF: > { %s369_s3 = sand.u32 1, %s729_s9   ;;  %p1016_p3 = scmp.ne.s32.totalorder %s1010_s26, 0 }
  0xb2   : > { %p1017_p7 = scmp.ge.s32.totalorder %s757_s16, 2  ;;  %s370_s28 = scalar_lea.sflag [#allocation4], %s369_s3 }
  0xb4   : > { %p498_p13 = pnand %p1017_p7, %p1016_p3 }
  0xb6   : > { %723 = dma.done.wait (!%p498_p13), %s370_s28, 128  }
  0xb7   : > { %725 = vsyncadd (!%p498_p13), %s370_s28, 4294967168  ;;  %s21_s16 = sadd.s32 1, %s757_s16   ;;  %s1018_s9 = smov %s733_s10 }
  0xb8   : > { %p18_p4 = scmp.ge.s32.totalorder %s21_s16, 4   ;;  %s1019_s10 = smov %s737_s11 }
  0xb9   : > { %s1020_s11 = smov %s838_s24  ;;  %s1021_s12 = smov %s745_s13 }
  0xba   : > { %s992_s13 = smov 0   ;;  %s1022_s14 = smov %s753_s15 }
  0xbb   : > { %s1023_s15 = smov %s1025_s19  ;;  %20 = sbr.rel (!%p18_p4) target bundleno = 9 (0x9), region = 98 }
  0xc2   :  { %375 = vsyncpa [#allocation3], 1 }
  0xc3   :  { %377 = vsyncpa [#allocation3 + $0x1], 1 }
  0xc4   :  { %378 = vsyncpa [#allocation6], 1 }
  0xc5   :  { %380 = vsyncpa [#allocation6 + $0x1], 1 }
  0xc6   :  { %381 = vsyncpa [#allocation4], 1 }
  0xc7   :  { %383 = vsyncpa [#allocation4 + $0x1], 1 }

</bundles_post_ra>
